<compile_context>
chip_gen: v7x
topology: tpu7x:2x2x1
jax: 0.10.0
libtpu: 0.0.40
codegen_flags: <defaults>
</compile_context>

<pallas_src>
import functools

import jax
import jax.numpy as jnp
from jax.experimental import pallas as pl
from jax.experimental.pallas import tpu as pltpu


def _cdiv(a, b):
    return -(-a // b)


# ----------------------------------------------------------------------------
# Pallas kernel: full BasicBlock for a (B*H, L) slab of lane-packed images
# ----------------------------------------------------------------------------
def _basic_block_kernel(x_ref, w1_ref, b1_ref, w2_ref, b2_ref, out_ref, *, H):
    """Block shapes (per grid step):
      x_ref   : (M, L) f32     M = B*H rows (B lane-groups stacked on sublanes),
                               L = P*W*C lanes (multiple of 128)
      w*_ref  : (3, L, L) bf16 row-lowered, block-diagonal conv weights with the
                               BN scale folded in (one matrix per dy tap)
      b*_ref  : (1, L) f32     folded BN bias, tiled over (P, W)
      out_ref : (M, L)
    """
    M, L = x_ref.shape
    B = M // H

    x = x_ref[...].astype(jnp.float32)                          # (M, L)

    # Row-within-image index -> boundary masks for the dy = +/-1 shifts
    # (covers the top/bottom halo AND the seams between sublane-stacked images;
    #  do NOT hoist under pl.when — this is per-block, recomputed each step).
    rimg = jax.lax.broadcasted_iota(jnp.int32, (B, H, L), 1).reshape(M, L)
    is_top = rimg == 0
    is_bot = rimg == H - 1

    def conv_bn(v, w_ref, b_ref):
        # dy shifts on the XLU (roll) + VPU mask — no misaligned sublane loads.
        v_dn = jnp.where(is_top, 0.0, pltpu.roll(v, shift=1, axis=0))      # v[r-1]
        v_up = jnp.where(is_bot, 0.0, pltpu.roll(v, shift=M - 1, axis=0))  # v[r+1]
        # bf16 MXU operands, f32 accumulate; straight acc += chain (v7x MRB).
        acc = jnp.dot(v_dn.astype(jnp.bfloat16), w_ref[0],
                      preferred_element_type=jnp.float32)
        acc += jnp.dot(v.astype(jnp.bfloat16), w_ref[1],
                       preferred_element_type=jnp.float32)
        acc += jnp.dot(v_up.astype(jnp.bfloat16), w_ref[2],
                       preferred_element_type=jnp.float32)
        return acc + b_ref[...]                                  # f32 VPU tail

    # stage 1: h = relu(bn1(conv1(x)))   (BN scale folded into w1)
    h = jnp.maximum(conv_bn(x, w1_ref, b1_ref), 0.0)
    # stage 2: out = relu(bn2(conv2(h)) + x)   (identity residual from x_ref)
    y = conv_bn(h, w2_ref, b2_ref)
    out_ref[...] = jnp.maximum(y + x, 0.0).astype(out_ref.dtype)


# ----------------------------------------------------------------------------
# Wrapper calling pallas_call
# ----------------------------------------------------------------------------
def _fused_block_pallas(x_rows, w1, b1, w2, b2, *, H, rows_per_step):
    M_total, L = x_rows.shape
    grid = M_total // rows_per_step
    kernel = functools.partial(_basic_block_kernel, H=H)

    # Grid-invariant weight/bias streams: single-buffered.
    w_spec = pl.BlockSpec((3, L, L), lambda i: (0, 0, 0),
                          pipeline_mode=pl.Buffered(1))
    b_spec = pl.BlockSpec((1, L), lambda i: (0, 0),
                          pipeline_mode=pl.Buffered(1))
    act_spec = pl.BlockSpec((rows_per_step, L), lambda i: (i, 0))

    return pl.pallas_call(
        kernel,
        out_shape=jax.ShapeDtypeStruct((M_total, L), x_rows.dtype),
        grid_spec=pltpu.PrefetchScalarGridSpec(
            num_scalar_prefetch=0,
            grid=(grid,),
            in_specs=[act_spec, w_spec, b_spec, w_spec, b_spec],
            out_specs=act_spec,
        ),
        compiler_params=pltpu.CompilerParams(
            dimension_semantics=("parallel",)),
    )(x_rows, w1, b1, w2, b2)


def _lower_conv_bn(w_oihw, gamma, beta, mean, var, W, P, eps=1e-5):
    """Fold inference BN into the conv and lower it to 3 row matmuls.

    Returns, per dy tap, a block-diagonal (P*W*Cin, P*W*Cout) bf16 matrix that
    encodes the dx shift, the channel contraction, the SAME-padding width
    zeros and the P-image lane packing; plus the folded f32 bias tiled over
    (P, W).
    NOTE: this dense lowering inflates MACs by ~W*C/(3*Cin) and grows
    quadratically in the lane width — only sensible for tiny W*C like here.
    """
    Cout, Cin, _, _ = w_oihw.shape
    scale = gamma / jnp.sqrt(var + eps)                          # (Cout,)
    bias = beta - mean * scale                                   # (Cout,)
    w_t = jnp.transpose(w_oihw, (2, 3, 1, 0)) * scale            # (3,3,Cin,Cout)
    # shift[dx][u, w] = 1 iff u == w + dx - 1  (clipped at the W boundaries)
    shift = jnp.stack([jnp.eye(W, W, 1 - dx, dtype=w_t.dtype)
                       for dx in range(3)])                      # (3, W, W)
    w_low = jnp.einsum('xuw,yxic->yuiwc', shift, w_t)
    w_low = w_low.reshape(3, W * Cin, W * Cout)
    # block-diagonal over the P lane-packed images
    eye_p = jnp.eye(P, dtype=w_low.dtype)
    w_big = jnp.einsum('pq,yab->ypaqb', eye_p, w_low)
    w_big = w_big.reshape(3, P * W * Cin, P * W * Cout)
    b_row = jnp.tile(bias, (P * W,)).reshape(1, P * W * Cout)
    return w_big.astype(jnp.bfloat16), b_row.astype(jnp.float32)


def basic_block_forward(x_nchw, params):
    """BasicBlock forward (stride=1, downsample=None, use_cbam=False).
    x_nchw: (N, C, H, W) like PyTorch; returns NCHW."""
    N, C, H, W = x_nchw.shape
    WC = W * C

    # ---- layout choices -----------------------------------------------------
    # Lane packing: P images side-by-side so the lane dim is a multiple of 128.
    P = 128 // WC if (WC % 128 != 0 and 128 % WC == 0) else 1
    L = P * WC
    G = _cdiv(N, P)                         # lane-groups
    N_pad = G * P
    # Sublane batching: lane-groups per grid step (M = B*H matmul rows),
    # target M ~ 256, but keep >= 2 parallel steps (v7x dual-TC) when G >= 2.
    B = max(1, min(G, max(1, 256 // H)))
    if G >= 2 and _cdiv(G, B) < 2:
        B = _cdiv(G, 2)
    if (B * H) % 8 != 0:                    # block rows must be 8-aligned (or full)
        B = G
    Gp = _cdiv(G, B) * B                    # pad #groups to a multiple of B

    # ---- glue transposes / packing (cheap XLA ops outside the kernel) -------
    x_flat = jnp.transpose(x_nchw, (0, 2, 3, 1)).reshape(N, H, WC)
    if N_pad != N:
        x_flat = jnp.concatenate(
            [x_flat, jnp.zeros((N_pad - N, H, WC), x_flat.dtype)], axis=0)
    x_g = x_flat.reshape(G, P, H, WC).transpose(0, 2, 1, 3).reshape(G, H, L)
    if Gp != G:
        x_g = jnp.concatenate(
            [x_g, jnp.zeros((Gp - G, H, L), x_g.dtype)], axis=0)
    x_rows = x_g.reshape(Gp * H, L)

    w1, b1 = _lower_conv_bn(params["conv1_w"], params["bn1_gamma"],
                            params["bn1_beta"], params["bn1_mean"],
                            params["bn1_var"], W, P)
    w2, b2 = _lower_conv_bn(params["conv2_w"], params["bn2_gamma"],
                            params["bn2_beta"], params["bn2_mean"],
                            params["bn2_var"], W, P)

    out_rows = _fused_block_pallas(x_rows, w1, b1, w2, b2,
                                   H=H, rows_per_step=B * H)

    out = out_rows.reshape(Gp, H, P, WC)[:G]
    out = out.transpose(0, 2, 1, 3).reshape(N_pad, H, W, C)[:N]
    # TODO(synk): stride>1 / downsample / CBAM branches of BasicBlock are not
    # instantiated (stride=1, downsample=None, use_cbam=False -> identity
    # residual, inplanes == planes).
    return jnp.transpose(out, (0, 3, 1, 2))


# ----------------------------------------------------------------------------
# Pure-JAX reference (for verification)
# ----------------------------------------------------------------------------
def _reference_forward(x_nchw, params):
    x = jnp.transpose(x_nchw, (0, 2, 3, 1))

    def conv(inp, w_oihw):
        w_hwio = jnp.transpose(w_oihw, (2, 3, 1, 0))
        return jax.lax.conv_general_dilated(
            inp, w_hwio, window_strides=(1, 1), padding="SAME",
            dimension_numbers=("NHWC", "HWIO", "NHWC"))

    def bn(inp, g, b, m, v, eps=1e-5):
        return (inp - m) / jnp.sqrt(v + eps) * g + b

    h = jax.nn.relu(bn(conv(x, params["conv1_w"]), params["bn1_gamma"],
                       params["bn1_beta"], params["bn1_mean"], params["bn1_var"]))
    o = bn(conv(h, params["conv2_w"]), params["bn2_gamma"],
           params["bn2_beta"], params["bn2_mean"], params["bn2_var"])
    o = jax.nn.relu(o + x)
    return jnp.transpose(o, (0, 3, 1, 2))


# ----------------------------------------------------------------------------
# Main
# ----------------------------------------------------------------------------
if __name__ == "__main__":
    N, C, H, W = 2, 4, 16, 16          # inplanes = planes = 4, stride = 1
    key = jax.random.PRNGKey(0)
    ks = jax.random.split(key, 12)

    fan_in = 9 * C
    params = {
        "conv1_w": jax.random.normal(ks[0], (C, C, 3, 3), jnp.float32)
                   * jnp.sqrt(2.0 / fan_in),
        "conv2_w": jax.random.normal(ks[1], (C, C, 3, 3), jnp.float32)
                   * jnp.sqrt(2.0 / fan_in),
        "bn1_gamma": jax.random.uniform(ks[2], (C,), jnp.float32, 0.5, 1.5),
        "bn1_beta":  0.1 * jax.random.normal(ks[3], (C,), jnp.float32),
        "bn1_mean":  0.1 * jax.random.normal(ks[4], (C,), jnp.float32),
        "bn1_var":   jax.random.uniform(ks[5], (C,), jnp.float32, 0.5, 1.5),
        "bn2_gamma": jax.random.uniform(ks[6], (C,), jnp.float32, 0.5, 1.5),
        "bn2_beta":  0.1 * jax.random.normal(ks[7], (C,), jnp.float32),
        "bn2_mean":  0.1 * jax.random.normal(ks[8], (C,), jnp.float32),
        "bn2_var":   jax.random.uniform(ks[9], (C,), jnp.float32, 0.5, 1.5),
    }

    x = jax.random.normal(ks[10], (N, C, H, W), jnp.float32)

    out = jax.jit(basic_block_forward)(x, params)
    out = jax.block_until_ready(out)

    ref = _reference_forward(x, params)
    assert out.shape == (N, C, H, W), out.shape
    # bf16 MXU operands (per perf review) -> loosened tolerance; real layout /
    # shift bugs would show up as O(1) errors, far above this.
    assert jnp.allclose(out, ref, atol=1e-1, rtol=1e-1), \
        float(jnp.max(jnp.abs(out - ref)))

    print("KERNEL_OK")
</pallas_src>

<mosaic_0001>
module attributes {stable_mosaic.version = 11 : i64} {
  func.func @_basic_block_kernel(%arg0: i32, %arg1: memref<16x128xf32, #tpu.memory_space<vmem>>, %arg2: memref<3x128x128xbf16, #tpu.memory_space<vmem>>, %arg3: memref<1x128xf32, #tpu.memory_space<vmem>>, %arg4: memref<3x128x128xbf16, #tpu.memory_space<vmem>>, %arg5: memref<1x128xf32, #tpu.memory_space<vmem>>, %arg6: memref<16x128xf32, #tpu.memory_space<vmem>>) attributes {dimension_semantics = [#tpu.dimension_semantics<parallel>], iteration_bounds = array<i64: 1>, scalar_prefetch = 0 : i64, scratch_operands = 0 : i64, tpu.core_type = #tpu.core_type<tc>, window_params = [{transform_indices = @transform_0, window_bounds = array<i64: 16, 128>}, {pipeline_mode = #tpu.pipeline_mode<synchronous>, transform_indices = @transform_1, window_bounds = array<i64: 3, 128, 128>}, {pipeline_mode = #tpu.pipeline_mode<synchronous>, transform_indices = @transform_2, window_bounds = array<i64: 1, 128>}, {pipeline_mode = #tpu.pipeline_mode<synchronous>, transform_indices = @transform_3, window_bounds = array<i64: 3, 128, 128>}, {pipeline_mode = #tpu.pipeline_mode<synchronous>, transform_indices = @transform_4, window_bounds = array<i64: 1, 128>}, {transform_indices = @transform_5, window_bounds = array<i64: 16, 128>}]} {
    %c0 = arith.constant 0 : index
    %c0_0 = arith.constant 0 : index
    %0 = vector.load %arg1[%c0, %c0_0] : memref<16x128xf32, #tpu.memory_space<vmem>>, vector<16x128xf32>
    %1 = tpu.iota {dimensions = array<i32: 1>} : vector<1x16x128xi32>
    %2 = vector.shape_cast %1 : vector<1x16x128xi32> to vector<16x128xi32>
    %c0_i32 = arith.constant 0 : i32
    %3 = vector.broadcast %c0_i32 : i32 to vector<16x128xi32>
    %4 = arith.cmpi eq, %2, %3 : vector<16x128xi32>
    %c15_i32 = arith.constant 15 : i32
    %5 = vector.broadcast %c15_i32 : i32 to vector<16x128xi32>
    %6 = arith.cmpi eq, %2, %5 : vector<16x128xi32>
    %c1_i32 = arith.constant 1 : i32
    %7 = tpu.dynamic_rotate %0 by %c1_i32 dim 0 : vector<16x128xf32>, i32 -> vector<16x128xf32>
    %cst = arith.constant 0.000000e+00 : f32
    %8 = vector.broadcast %cst : f32 to vector<16x128xf32>
    %9 = arith.select %4, %8, %7 : vector<16x128xi1>, vector<16x128xf32>
    %c15_i32_1 = arith.constant 15 : i32
    %10 = tpu.dynamic_rotate %0 by %c15_i32_1 dim 0 : vector<16x128xf32>, i32 -> vector<16x128xf32>
    %cst_2 = arith.constant 0.000000e+00 : f32
    %11 = vector.broadcast %cst_2 : f32 to vector<16x128xf32>
    %12 = arith.select %6, %11, %10 : vector<16x128xi1>, vector<16x128xf32>
    %13 = arith.truncf %9 : vector<16x128xf32> to vector<16x128xbf16>
    %c0_3 = arith.constant 0 : index
    %c0_4 = arith.constant 0 : index
    %c0_5 = arith.constant 0 : index
    %14 = vector.load %arg2[%c0_3, %c0_4, %c0_5] : memref<3x128x128xbf16, #tpu.memory_space<vmem>>, vector<1x128x128xbf16>
    %15 = vector.shape_cast %14 : vector<1x128x128xbf16> to vector<128x128xbf16>
    %cst_6 = arith.constant dense<0.000000e+00> : vector<16x128xf32>
    %16 = tpu.matmul %13, %15, %cst_6 {dimension_numbers = #tpu.dot_dimension_numbers<[1], [0], [0], [1], [0, 0, 1, 1], [], []>} : vector<16x128xbf16>, vector<128x128xbf16>, vector<16x128xf32> -> vector<16x128xf32>
    %17 = arith.truncf %0 : vector<16x128xf32> to vector<16x128xbf16>
    %c1 = arith.constant 1 : index
    %c0_7 = arith.constant 0 : index
    %c0_8 = arith.constant 0 : index
    %18 = vector.load %arg2[%c1, %c0_7, %c0_8] : memref<3x128x128xbf16, #tpu.memory_space<vmem>>, vector<1x128x128xbf16>
    %19 = vector.shape_cast %18 : vector<1x128x128xbf16> to vector<128x128xbf16>
    %cst_9 = arith.constant dense<0.000000e+00> : vector<16x128xf32>
    %20 = tpu.matmul %17, %19, %cst_9 {dimension_numbers = #tpu.dot_dimension_numbers<[1], [0], [0], [1], [0, 0, 1, 1], [], []>} : vector<16x128xbf16>, vector<128x128xbf16>, vector<16x128xf32> -> vector<16x128xf32>
    %21 = arith.addf %16, %20 : vector<16x128xf32>
    %22 = arith.truncf %12 : vector<16x128xf32> to vector<16x128xbf16>
    %c2 = arith.constant 2 : index
    %c0_10 = arith.constant 0 : index
    %c0_11 = arith.constant 0 : index
    %23 = vector.load %arg2[%c2, %c0_10, %c0_11] : memref<3x128x128xbf16, #tpu.memory_space<vmem>>, vector<1x128x128xbf16>
    %24 = vector.shape_cast %23 : vector<1x128x128xbf16> to vector<128x128xbf16>
    %cst_12 = arith.constant dense<0.000000e+00> : vector<16x128xf32>
    %25 = tpu.matmul %22, %24, %cst_12 {dimension_numbers = #tpu.dot_dimension_numbers<[1], [0], [0], [1], [0, 0, 1, 1], [], []>} : vector<16x128xbf16>, vector<128x128xbf16>, vector<16x128xf32> -> vector<16x128xf32>
    %26 = arith.addf %21, %25 : vector<16x128xf32>
    %c0_13 = arith.constant 0 : index
    %c0_14 = arith.constant 0 : index
    %27 = vector.load %arg3[%c0_13, %c0_14] : memref<1x128xf32, #tpu.memory_space<vmem>>, vector<1x128xf32>
    %28 = vector.broadcast %27 : vector<1x128xf32> to vector<16x128xf32>
    %29 = arith.addf %26, %28 : vector<16x128xf32>
    %cst_15 = arith.constant 0.000000e+00 : f32
    %30 = vector.broadcast %cst_15 : f32 to vector<16x128xf32>
    %31 = arith.maximumf %29, %30 : vector<16x128xf32>
    %c1_i32_16 = arith.constant 1 : i32
    %32 = tpu.dynamic_rotate %31 by %c1_i32_16 dim 0 : vector<16x128xf32>, i32 -> vector<16x128xf32>
    %cst_17 = arith.constant 0.000000e+00 : f32
    %33 = vector.broadcast %cst_17 : f32 to vector<16x128xf32>
    %34 = arith.select %4, %33, %32 : vector<16x128xi1>, vector<16x128xf32>
    %c15_i32_18 = arith.constant 15 : i32
    %35 = tpu.dynamic_rotate %31 by %c15_i32_18 dim 0 : vector<16x128xf32>, i32 -> vector<16x128xf32>
    %cst_19 = arith.constant 0.000000e+00 : f32
    %36 = vector.broadcast %cst_19 : f32 to vector<16x128xf32>
    %37 = arith.select %6, %36, %35 : vector<16x128xi1>, vector<16x128xf32>
    %38 = arith.truncf %34 : vector<16x128xf32> to vector<16x128xbf16>
    %c0_20 = arith.constant 0 : index
    %c0_21 = arith.constant 0 : index
    %c0_22 = arith.constant 0 : index
    %39 = vector.load %arg4[%c0_20, %c0_21, %c0_22] : memref<3x128x128xbf16, #tpu.memory_space<vmem>>, vector<1x128x128xbf16>
    %40 = vector.shape_cast %39 : vector<1x128x128xbf16> to vector<128x128xbf16>
    %cst_23 = arith.constant dense<0.000000e+00> : vector<16x128xf32>
    %41 = tpu.matmul %38, %40, %cst_23 {dimension_numbers = #tpu.dot_dimension_numbers<[1], [0], [0], [1], [0, 0, 1, 1], [], []>} : vector<16x128xbf16>, vector<128x128xbf16>, vector<16x128xf32> -> vector<16x128xf32>
    %42 = arith.truncf %31 : vector<16x128xf32> to vector<16x128xbf16>
    %c1_24 = arith.constant 1 : index
    %c0_25 = arith.constant 0 : index
    %c0_26 = arith.constant 0 : index
    %43 = vector.load %arg4[%c1_24, %c0_25, %c0_26] : memref<3x128x128xbf16, #tpu.memory_space<vmem>>, vector<1x128x128xbf16>
    %44 = vector.shape_cast %43 : vector<1x128x128xbf16> to vector<128x128xbf16>
    %cst_27 = arith.constant dense<0.000000e+00> : vector<16x128xf32>
    %45 = tpu.matmul %42, %44, %cst_27 {dimension_numbers = #tpu.dot_dimension_numbers<[1], [0], [0], [1], [0, 0, 1, 1], [], []>} : vector<16x128xbf16>, vector<128x128xbf16>, vector<16x128xf32> -> vector<16x128xf32>
    %46 = arith.addf %41, %45 : vector<16x128xf32>
    %47 = arith.truncf %37 : vector<16x128xf32> to vector<16x128xbf16>
    %c2_28 = arith.constant 2 : index
    %c0_29 = arith.constant 0 : index
    %c0_30 = arith.constant 0 : index
    %48 = vector.load %arg4[%c2_28, %c0_29, %c0_30] : memref<3x128x128xbf16, #tpu.memory_space<vmem>>, vector<1x128x128xbf16>
    %49 = vector.shape_cast %48 : vector<1x128x128xbf16> to vector<128x128xbf16>
    %cst_31 = arith.constant dense<0.000000e+00> : vector<16x128xf32>
    %50 = tpu.matmul %47, %49, %cst_31 {dimension_numbers = #tpu.dot_dimension_numbers<[1], [0], [0], [1], [0, 0, 1, 1], [], []>} : vector<16x128xbf16>, vector<128x128xbf16>, vector<16x128xf32> -> vector<16x128xf32>
    %51 = arith.addf %46, %50 : vector<16x128xf32>
    %c0_32 = arith.constant 0 : index
    %c0_33 = arith.constant 0 : index
    %52 = vector.load %arg5[%c0_32, %c0_33] : memref<1x128xf32, #tpu.memory_space<vmem>>, vector<1x128xf32>
    %53 = vector.broadcast %52 : vector<1x128xf32> to vector<16x128xf32>
    %54 = arith.addf %51, %53 : vector<16x128xf32>
    %55 = arith.addf %54, %0 : vector<16x128xf32>
    %cst_34 = arith.constant 0.000000e+00 : f32
    %56 = vector.broadcast %cst_34 : f32 to vector<16x128xf32>
    %57 = arith.maximumf %55, %56 : vector<16x128xf32>
    %c0_35 = arith.constant 0 : index
    %c0_36 = arith.constant 0 : index
    %58 = vector.load %arg6[%c0_35, %c0_36] : memref<16x128xf32, #tpu.memory_space<vmem>>, vector<16x128xf32>
    tpu.vector_store %arg6[%c0_35, %c0_36], %57 {strides = array<i32>} : memref<16x128xf32, #tpu.memory_space<vmem>>, vector<16x128xf32>,
    return
  }
  func.func @transform_0(%arg0: i32) -> (i32, i32) {
    %c0_i32 = arith.constant 0 : i32
    %c0_i32_0 = arith.constant 0 : i32
    return %arg0, %c0_i32 : i32, i32
  }
  func.func @transform_1(%arg0: i32) -> (i32, i32, i32) {
    %c0_i32 = arith.constant 0 : i32
    %c0_i32_0 = arith.constant 0 : i32
    %c0_i32_1 = arith.constant 0 : i32
    %c0_i32_2 = arith.constant 0 : i32
    return %c0_i32, %c0_i32_0, %c0_i32_1 : i32, i32, i32
  }
  func.func @transform_2(%arg0: i32) -> (i32, i32) {
    %c0_i32 = arith.constant 0 : i32
    %c0_i32_0 = arith.constant 0 : i32
    %c0_i32_1 = arith.constant 0 : i32
    return %c0_i32, %c0_i32_0 : i32, i32
  }
  func.func @transform_3(%arg0: i32) -> (i32, i32, i32) {
    %c0_i32 = arith.constant 0 : i32
    %c0_i32_0 = arith.constant 0 : i32
    %c0_i32_1 = arith.constant 0 : i32
    %c0_i32_2 = arith.constant 0 : i32
    return %c0_i32, %c0_i32_0, %c0_i32_1 : i32, i32, i32
  }
  func.func @transform_4(%arg0: i32) -> (i32, i32) {
    %c0_i32 = arith.constant 0 : i32
    %c0_i32_0 = arith.constant 0 : i32
    %c0_i32_1 = arith.constant 0 : i32
    return %c0_i32, %c0_i32_0 : i32, i32
  }
  func.func @transform_5(%arg0: i32) -> (i32, i32) {
    %c0_i32 = arith.constant 0 : i32
    %c0_i32_0 = arith.constant 0 : i32
    return %arg0, %c0_i32 : i32, i32
  }
}

</mosaic_0001>

<bundles_post_ra>
// kernel: tile.13
= control target key start
LH: loop header
LB: loop body
LE: loop exit
PB: predicated region body
PF: predicated region fallthrough
CT: control target
= control target key end

     0   :  { %s40_s0 = inlined_call_operand.vmem [shape: f32[4], index: 0, kind: input, shape index: {}]   ;;  %s41_s1 = inlined_call_operand.vmem [shape: f32[32,4], index: 1, kind: output, shape index: {}]  }
   0x1   :  { %v4_v0 = vld [vmem:[%s40_s0] ss:$0 sm:$0xff] }
   0x2   :  { %5 = vst [vmem:[%s41_s1] sm:$0xff] %v4_v0  ;;  %12 = vst [vmem:[%s41_s1 + $0x8] sm:$0xff] %v4_v0 }
   0x3   :  { %13 = vst [vmem:[%s41_s1 + $0x10] sm:$0xff] %v4_v0  ;;  %14 = vst [vmem:[%s41_s1 + $0x18] sm:$0xff] %v4_v0 }

// kernel: tile.14
= control target key start
LH: loop header
LB: loop body
LE: loop exit
PB: predicated region body
PF: predicated region fallthrough
CT: control target
= control target key end

     0   :  { %s259_s10 = smov 124   ;;  %s260_s11 = smov 116   ;;  %vm3_vm0 = vcmask 31744   ;;  %vm9_vm1 = vcmask 1048544   ;;  %vm15_vm2 = vcmask 1015744   ;;  %vm21_vm3 = vcmask 982944   ;;  %s399_s0 = inlined_call_operand.vmem [shape: f32[32,4], index: 0, kind: input, shape index: {}]   ;;  %s400_s1 = inlined_call_operand.vmem [shape: f32[1,128], index: 1, kind: output, shape index: {}]  }
   0x1   :  { %v197_v0 = vld [vmem:[%s399_s0 + $0x1f] sm:$0x1]   ;;  %v199_v1 = vld [vmem:[%s399_s0 + $0x1d] sm:$0x1]   ;;  %v198_v2 = vld [vmem:[%s399_s0 + $0x1e] sm:$0x1]  }
   0x2   :  { %7 = vrot.lane.b32.xlu0 %v197_v0, %s259_s10  ;;  %19 = vrot.lane.b32.xlu1 %v199_v1, %s260_s11  ;;  %v200_v3 = vld [vmem:[%s399_s0 + $0x1c] sm:$0x1]   ;;  %s261_s16 = smov 120   ;;  %s262_s17 = smov 112   ;;  %v201_v4 = vld [vmem:[%s399_s0 + $0x1b] sm:$0x1]  }
   0x3   :  { %v202_v5 = vld [vmem:[%s399_s0 + $0x1a] sm:$0x1]   ;;  %s263_s22 = smov 108   ;;  %s264_s23 = smov 104   ;;  %v203_v6 = vld [vmem:[%s399_s0 + $0x19] sm:$0x1]  }
   0x4   :  { %v204_v7 = vld [vmem:[%s399_s0 + $0x18] sm:$0x1]   ;;  %s265_s28 = smov 100   ;;  %s266_s29 = smov 96   ;;  %v205_v8 = vld [vmem:[%s399_s0 + $0x17] sm:$0x1]  }
   0x5   :  { %v206_v9 = vld [vmem:[%s399_s0 + $0x16] sm:$0x1]   ;;  %v2_v10 = vld [vmem:[%s399_s0] sm:$0x1]   ;;  %s267_s7 = smov 92   ;;  %s268_s8 = smov 88  }
   0x6   :  { %13 = vrot.lane.b32.xlu0 %v198_v2, %s261_s16  ;;  %25 = vrot.lane.b32.xlu1 %v200_v3, %s262_s17  ;;  %4 = vst.msk [vmem:[#allocation0] sm:$0x1] %vm3_vm0, %v2_v10   ;;  %v207_v11 = vld [vmem:[%s399_s0 + $0x15] sm:$0x1]   ;;  %v208_v12 = vld [vmem:[%s399_s0 + $0x14] sm:$0x1]  }
   0x7   :  { %s269_s13 = smov 84   ;;  %s270_s14 = smov 80   ;;  %v209_v13 = vld [vmem:[%s399_s0 + $0x13] sm:$0x1]   ;;  %v210_v14 = vld [vmem:[%s399_s0 + $0x12] sm:$0x1]  }
   0x8   :  { %s271_s19 = smov 76   ;;  %s272_s20 = smov 72   ;;  %v211_v15 = vld [vmem:[%s399_s0 + $0x11] sm:$0x1]   ;;  %v212_v16 = vld [vmem:[%s399_s0 + $0x10] sm:$0x1]  }
   0x9   :  { %s273_s25 = smov 68   ;;  %s274_s26 = smov 64   ;;  %v213_v17 = vld [vmem:[%s399_s0 + $0xf] sm:$0x1]   ;;  %v214_v18 = vld [vmem:[%s399_s0 + $0xe] sm:$0x1]  }
   0xa   :  { %31 = vrot.lane.b32.xlu0 %v201_v4, %s263_s22  ;;  %37 = vrot.lane.b32.xlu1 %v202_v5, %s264_s23  ;;  %s275_s2 = smov 60   ;;  %s276_s3 = smov 56   ;;  %v215_v19 = vld [vmem:[%s399_s0 + $0xd] sm:$0x1]   ;;  %v216_v20 = vld [vmem:[%s399_s0 + $0xc] sm:$0x1]  }
   0xb   :  { %s278_s9 = smov 48   ;;  %v217_v21 = vld [vmem:[%s399_s0 + $0xb] sm:$0x1]   ;;  %v218_v22 = vld [vmem:[%s399_s0 + $0xa] sm:$0x1]   ;;  %s280_s15 = smov 40  }
   0xc   :  { %v219_v23 = vld [vmem:[%s399_s0 + $0x9] sm:$0x1]   ;;  %v220_v24 = vld [vmem:[%s399_s0 + $0x8] sm:$0x1]   ;;  %s282_s21 = smov 32   ;;  %s284_s27 = smov 24  }
   0xd   :  { %v221_v25 = vld [vmem:[%s399_s0 + $0x7] sm:$0x1]   ;;  %v222_v26 = vld [vmem:[%s399_s0 + $0x6] sm:$0x1]   ;;  %v223_v27 = vld [vmem:[%s399_s0 + $0x5] sm:$0x1]  }
   0xe   :  { %43 = vrot.lane.b32.xlu0 %v203_v6, %s265_s28  ;;  %49 = vrot.lane.b32.xlu1 %v204_v7, %s266_s29  ;;  %v224_v28 = vld [vmem:[%s399_s0 + $0x4] sm:$0x1]   ;;  %s286_s4 = smov 16   ;;  %v225_v29 = vld [vmem:[%s399_s0 + $0x3] sm:$0x1]   ;;  %s288_s10 = smov 8  }
   0xf   :  { %v226_v30 = vld [vmem:[%s399_s0 + $0x2] sm:$0x1]   ;;  %v227_v31 = vld [vmem:[%s399_s0 + $0x1] sm:$0x1]   ;;  %s289_s0 = smov 4   ;;  %vm27_vm4 = vcmask 950144  }
  0x10   :  { %vm33_vm5 = vcmask 917344   ;;  %vm39_vm6 = vcmask 884544   ;;  %vm45_vm7 = vcmask 851744   ;;  %vm51_vm8 = vcmask 818944  }
  0x11   :  { %vm57_vm9 = vcmask 786144   ;;  %vm63_vm10 = vcmask 753344   ;;  %vm69_vm11 = vcmask 720544   ;;  %vm75_vm12 = vcmask 687744  }
  0x12   :  { %55 = vrot.lane.b32.xlu0 %v205_v8, %s267_s7  ;;  %61 = vrot.lane.b32.xlu1 %v206_v9, %s268_s8  ;;  %s277_s8 = smov 52   ;;  %vm81_vm13 = vcmask 654944   ;;  %vm87_vm14 = vcmask 622144   ;;  %vm93_vm15 = vcmask 589344   ;;  %vm99_vm0 = vcmask 556544  }
  0x16   :  { %67 = vrot.lane.b32.xlu0 %v207_v11, %s269_s13  ;;  %73 = vrot.lane.b32.xlu1 %v208_v12, %s270_s14  ;;  %s279_s14 = smov 44  }
  0x1a   :  { %79 = vrot.lane.b32.xlu0 %v209_v13, %s271_s19  ;;  %85 = vrot.lane.b32.xlu1 %v210_v14, %s272_s20  ;;  %s281_s20 = smov 36  }
  0x1e   :  { %91 = vrot.lane.b32.xlu0 %v211_v15, %s273_s25  ;;  %97 = vrot.lane.b32.xlu1 %v212_v16, %s274_s26  ;;  %s283_s26 = smov 28  }
  0x22   :  { %103 = vrot.lane.b32.xlu0 %v213_v17, %s275_s2  ;;  %109 = vrot.lane.b32.xlu1 %v214_v18, %s276_s3  ;;  %s285_s3 = smov 20  }
  0x26   :  { %115 = vrot.lane.b32.xlu0 %v215_v19, %s277_s8  ;;  %121 = vrot.lane.b32.xlu1 %v216_v20, %s278_s9  ;;  %s287_s9 = smov 12  }
  0x2a   :  { %127 = vrot.lane.b32.xlu0 %v217_v21, %s279_s14  ;;  %133 = vrot.lane.b32.xlu1 %v218_v22, %s280_s15 }
  0x2e   :  { %139 = vrot.lane.b32.xlu0 %v219_v23, %s281_s20  ;;  %145 = vrot.lane.b32.xlu1 %v220_v24, %s282_s21 }
  0x32   :  { %151 = vrot.lane.b32.xlu0 %v221_v25, %s283_s26  ;;  %157 = vrot.lane.b32.xlu1 %v222_v26, %s284_s27 }
  0x36   :  { %163 = vrot.lane.b32.xlu0 %v223_v27, %s285_s3  ;;  %169 = vrot.lane.b32.xlu1 %v224_v28, %s286_s4 }
  0x3a   :  { %175 = vrot.lane.b32.xlu0 %v225_v29, %s287_s9  ;;  %181 = vrot.lane.b32.xlu1 %v226_v30, %s288_s10 }
  0x3e   :  { %187 = vrot.lane.b32.xlu0 %v227_v31, %s289_s0 }
  0x74   :  { %v8_v32 = vpop.permute.xlu0 %7   ;;  %v20_v33 = vpop.permute.xlu1 %19  }
  0x75   :  { %10 = vst.msk [vmem:[#allocation0] sm:$0x1] %vm9_vm1, %v8_v32   ;;  %vm105_vm1 = vcmask 523744  }
  0x78   :  { %v14_v34 = vpop.permute.xlu0 %13   ;;  %v26_v35 = vpop.permute.xlu1 %25  }
  0x79   :  { %16 = vst.msk [vmem:[#allocation0] sm:$0x1] %vm15_vm2, %v14_v34   ;;  %vm111_vm2 = vcmask 490944  }
  0x7a   :  { %22 = vst.msk [vmem:[#allocation0] sm:$0x1] %vm21_vm3, %v20_v33   ;;  %vm117_vm3 = vcmask 458144  }
  0x7b   :  { %28 = vst.msk [vmem:[#allocation0] sm:$0x1] %vm27_vm4, %v26_v35   ;;  %vm123_vm4 = vcmask 425344  }
  0x7c   :  { %v32_v36 = vpop.permute.xlu0 %31   ;;  %v38_v37 = vpop.permute.xlu1 %37  }
  0x7d   :  { %34 = vst.msk [vmem:[#allocation0] sm:$0x1] %vm33_vm5, %v32_v36   ;;  %vm129_vm5 = vcmask 392544  }
  0x7e   :  { %40 = vst.msk [vmem:[#allocation0] sm:$0x1] %vm39_vm6, %v38_v37   ;;  %vm135_vm6 = vcmask 359744  }
  0x80   :  { %v44_v38 = vpop.permute.xlu0 %43   ;;  %v50_v39 = vpop.permute.xlu1 %49  }
  0x81   :  { %46 = vst.msk [vmem:[#allocation0] sm:$0x1] %vm45_vm7, %v44_v38   ;;  %vm141_vm7 = vcmask 326944  }
  0x82   :  { %52 = vst.msk [vmem:[#allocation0] sm:$0x1] %vm51_vm8, %v50_v39   ;;  %vm147_vm8 = vcmask 294144  }
  0x84   :  { %v56_v40 = vpop.permute.xlu0 %55   ;;  %v62_v41 = vpop.permute.xlu1 %61  }
  0x85   :  { %58 = vst.msk [vmem:[#allocation0] sm:$0x1] %vm57_vm9, %v56_v40   ;;  %vm153_vm9 = vcmask 261344  }
  0x86   :  { %64 = vst.msk [vmem:[#allocation0] sm:$0x1] %vm63_vm10, %v62_v41   ;;  %vm159_vm10 = vcmask 228544  }
  0x88   :  { %v68_v42 = vpop.permute.xlu0 %67   ;;  %v74_v43 = vpop.permute.xlu1 %73  }
  0x89   :  { %70 = vst.msk [vmem:[#allocation0] sm:$0x1] %vm69_vm11, %v68_v42   ;;  %vm165_vm11 = vcmask 195744  }
  0x8a   :  { %76 = vst.msk [vmem:[#allocation0] sm:$0x1] %vm75_vm12, %v74_v43   ;;  %vm171_vm12 = vcmask 162944  }
  0x8c   :  { %v80_v44 = vpop.permute.xlu0 %79   ;;  %v86_v45 = vpop.permute.xlu1 %85  }
  0x8d   :  { %82 = vst.msk [vmem:[#allocation0] sm:$0x1] %vm81_vm13, %v80_v44   ;;  %vm177_vm13 = vcmask 130144  }
  0x8e   :  { %88 = vst.msk [vmem:[#allocation0] sm:$0x1] %vm87_vm14, %v86_v45   ;;  %vm183_vm14 = vcmask 97344  }
  0x90   :  { %v92_v46 = vpop.permute.xlu0 %91   ;;  %v98_v47 = vpop.permute.xlu1 %97  }
  0x91   :  { %94 = vst.msk [vmem:[#allocation0] sm:$0x1] %vm93_vm15, %v92_v46   ;;  %vm189_vm15 = vcmask 64544  }
  0x92   :  { %100 = vst.msk [vmem:[#allocation0] sm:$0x1] %vm99_vm0, %v98_v47  }
  0x94   :  { %v104_v48 = vpop.permute.xlu0 %103   ;;  %v110_v49 = vpop.permute.xlu1 %109  }
  0x95   :  { %106 = vst.msk [vmem:[#allocation0] sm:$0x1] %vm105_vm1, %v104_v48  }
  0x96   :  { %112 = vst.msk [vmem:[#allocation0] sm:$0x1] %vm111_vm2, %v110_v49  }
  0x98   :  { %v116_v50 = vpop.permute.xlu0 %115   ;;  %v122_v51 = vpop.permute.xlu1 %121  }
  0x99   :  { %118 = vst.msk [vmem:[#allocation0] sm:$0x1] %vm117_vm3, %v116_v50  }
  0x9a   :  { %124 = vst.msk [vmem:[#allocation0] sm:$0x1] %vm123_vm4, %v122_v51  }
  0x9c   :  { %v128_v52 = vpop.permute.xlu0 %127   ;;  %v134_v53 = vpop.permute.xlu1 %133  }
  0x9d   :  { %130 = vst.msk [vmem:[#allocation0] sm:$0x1] %vm129_vm5, %v128_v52  }
  0x9e   :  { %136 = vst.msk [vmem:[#allocation0] sm:$0x1] %vm135_vm6, %v134_v53  }
  0xa0   :  { %v140_v54 = vpop.permute.xlu0 %139   ;;  %v146_v55 = vpop.permute.xlu1 %145  }
  0xa1   :  { %142 = vst.msk [vmem:[#allocation0] sm:$0x1] %vm141_vm7, %v140_v54  }
  0xa2   :  { %148 = vst.msk [vmem:[#allocation0] sm:$0x1] %vm147_vm8, %v146_v55  }
  0xa4   :  { %v152_v56 = vpop.permute.xlu0 %151   ;;  %v158_v57 = vpop.permute.xlu1 %157  }
  0xa5   :  { %154 = vst.msk [vmem:[#allocation0] sm:$0x1] %vm153_vm9, %v152_v56  }
  0xa6   :  { %160 = vst.msk [vmem:[#allocation0] sm:$0x1] %vm159_vm10, %v158_v57  }
  0xa8   :  { %v164_v58 = vpop.permute.xlu0 %163   ;;  %v170_v59 = vpop.permute.xlu1 %169  }
  0xa9   :  { %166 = vst.msk [vmem:[#allocation0] sm:$0x1] %vm165_vm11, %v164_v58  }
  0xaa   :  { %172 = vst.msk [vmem:[#allocation0] sm:$0x1] %vm171_vm12, %v170_v59  }
  0xac   :  { %v176_v60 = vpop.permute.xlu0 %175   ;;  %v182_v61 = vpop.permute.xlu1 %181  }
  0xad   :  { %178 = vst.msk [vmem:[#allocation0] sm:$0x1] %vm177_vm13, %v176_v60  }
  0xae   :  { %184 = vst.msk [vmem:[#allocation0] sm:$0x1] %vm183_vm14, %v182_v61  }
  0xb0   :  { %v188_v62 = vpop.permute.xlu0 %187  }
  0xb1   :  { %190 = vst.msk [vmem:[#allocation0] sm:$0x1] %vm189_vm15, %v188_v62  }
  0xb8   :  { %v194_v63 = vld [vmem:[#allocation0] sm:$0x1] }
  0xb9   :  { %196 = vst [vmem:[%s400_s1] sm:$0x1] %v194_v63 }

// kernel: basic_block_forward.1
= control target key start
LH: loop header
LB: loop body
LE: loop exit
PB: predicated region body
PF: predicated region fallthrough
CT: control target
= control target key end

     0   :  { %v1087_v0 = vmov 0.0   ;;  %vm1088_vm0 = vmmov 0   ;;  %v23_v11 = vlaneseq  ;;  %vm1089_vm3 = vmmov 1   ;;  %s1394_s1 = inlined_call_operand.vmem [shape: bf16[3,128,128], index: 1, kind: input, shape index: {}]   ;;  %s1395_s0 = inlined_call_operand.vmem [shape: f32[16,128], index: 0, kind: input, shape index: {}]   ;;  %s1396_s3 = inlined_call_operand.vmem [shape: bf16[3,128,128], index: 3, kind: input, shape index: {}]   ;;  %s1397_s2 = inlined_call_operand.vmem [shape: f32[1,128], index: 2, kind: input, shape index: {}]   ;;  %s1398_s4 = inlined_call_operand.vmem [shape: f32[1,128], index: 4, kind: input, shape index: {}]   ;;  %s1399_s5 = inlined_call_operand.vmem [shape: f32[16,128], index: 5, kind: output, shape index: {}]  }
   0x1   :  { %916 = vmatprep.subr.bf16.mxu0 %v1087_v0  ;;  %936 = vmatprep.subr.bf16.mxu1 %v1087_v0  ;;  %v1039_v1 = vld [vmem:[%s1394_s1 + $0x40] sm:$0xff]   ;;  %v1041_v3 = vld [vmem:[%s1394_s1 + $0x48] sm:$0xff]   ;;  %v1043_v5 = vld [vmem:[%s1394_s1 + $0x50] sm:$0xff]  }
   0x2   :  { %v1040_v2 = vld [vmem:[%s1394_s1] sm:$0xff]   ;;  %932 = vmatprep.mubr.msk.bf16.mxu0 %vm1088_vm0, %v1087_v0  ;;  %952 = vmatprep.mubr.msk.bf16.mxu1 %vm1088_vm0, %v1087_v0  ;;  %v1042_v4 = vld [vmem:[%s1394_s1 + $0x8] sm:$0xff]   ;;  %v1044_v6 = vld [vmem:[%s1394_s1 + $0x10] sm:$0xff]   ;;  %v1182_v16 = vshrl.u32 %v23_v11, 7 }
   0x3   :  { %917 = vmatpush3.bf16.msra.mxu0 %v1039_v1  ;;  %937 = vmatpush3.bf16.msra.mxu1 %v1040_v2  ;;  %v1045_v7 = vld [vmem:[%s1394_s1 + $0x58] sm:$0xff]   ;;  %v1047_v9 = vld [vmem:[%s1394_s1 + $0x60] sm:$0xff]   ;;  %v1049_v12 = vld [vmem:[%s1394_s1 + $0x68] sm:$0xff]  }
   0x4   :  { %918 = vmatprep.subr.bf16.mxu0 %v1087_v0  ;;  %938 = vmatprep.subr.bf16.mxu1 %v1087_v0  ;;  %v1046_v8 = vld [vmem:[%s1394_s1 + $0x18] sm:$0xff]   ;;  %v1048_v10 = vld [vmem:[%s1394_s1 + $0x20] sm:$0xff]   ;;  %v1050_v13 = vld [vmem:[%s1394_s1 + $0x28] sm:$0xff]   ;;  %vm32_vm1 = vcmp.lt.s32.totalorder %v1182_v16, 1  ;;  %vm860_vm2 = vcmp.ne.s32.totalorder %v1182_v16, 0  ;;  %v25_v37 = vadd.s32 8, %v1182_v16 }
   0x5   :  { %v1174_v14 = vld [vmem:[%s1395_s0] sm:$0xff]  ;;  %v1180_v15 = vld [vmem:[%s1395_s0 + $0x8] sm:$0xff]  ;;  %v1051_v17 = vld [vmem:[%s1394_s1 + $0x70] sm:$0xff]   ;;  %vm39_vm5 = vcmp.lt.s32.totalorder %v1182_v16, 7 }
   0x6   :  { %v1052_v18 = vld [vmem:[%s1394_s1 + $0x30] sm:$0xff]   ;;  %v30_v19 = vrot.slane %v1174_v14, 7  ;;  %v31_v20 = vrot.slane %v1180_v15, 7  ;;  %v1053_v21 = vld [vmem:[%s1394_s1 + $0x78] sm:$0xff]   ;;  %v61_v25 = vpack.c.bf16 %v1180_v15, %v1174_v14  ;;  %v1055_v27 = vld [vmem:[%s1394_s1 + $0x80] sm:$0xff]   ;;  %v37_v34 = vrot.slane %v1174_v14, 1 }
   0x7   :  { %919 = vmatpush3.bf16.msra.mxu0 %v1041_v3  ;;  %939 = vmatpush3.bf16.msra.mxu1 %v1042_v4  ;;  %v1054_v22 = vld [vmem:[%s1394_s1 + $0x38] sm:$0xff]   ;;  %vm1214_vm4 = vmpackc.low %vm1089_vm3, %vm860_vm2  ;;  %v1056_v29 = vld [vmem:[%s1394_s1 + $0x88] sm:$0xff]   ;;  %v38_v35 = vrot.slane %v1180_v15, 1  ;;  %vm861_vm6 = vcmp.ne.s32.totalorder %v25_v37, 15 }
   0x8   :  { %920 = vmatprep.subr.bf16.mxu0 %v1087_v0  ;;  %940 = vmatprep.subr.bf16.mxu1 %v1087_v0  ;;  %v33_v23 = vsel %vm32_vm1, %v30_v19, %v31_v20  ;;  %v34_v24 = vsel %vm32_vm1, %v31_v20, %v30_v19  ;;  %v1057_v30 = vld [vmem:[%s1394_s1 + $0x90] sm:$0xff]   ;;  %v1058_v31 = vld [vmem:[%s1394_s1 + $0x98] sm:$0xff]   ;;  %v1059_v32 = vld [vmem:[%s1394_s1 + $0xa0] sm:$0xff]  }
   0x9   :  { %v764_v26 = vpack.c.bf16 %v33_v23, %v34_v24  ;;  %v1060_v33 = vld [vmem:[%s1394_s1 + $0xa8] sm:$0xff]   ;;  %v1061_v36 = vld [vmem:[%s1394_s1 + $0xb0] sm:$0xff]   ;;  %v1062_v38 = vld [vmem:[%s1394_s1 + $0xb8] sm:$0xff]   ;;  %v40_v39 = vsel %vm39_vm5, %v37_v34, %v38_v35  ;;  %v41_v40 = vsel %vm39_vm5, %v38_v35, %v37_v34 }
   0xa   :  { %v792_v41 = vpack.c.bf16 %v41_v40, %v40_v39  ;;  %vm1263_vm7 = vmpackc.low %vm861_vm6, %vm1089_vm3  ;;  %v1063_v43 = vld [vmem:[%s1396_s3 + $0x40] sm:$0xff]   ;;  %v1064_v44 = vld [vmem:[%s1396_s3 + $0x48] sm:$0xff]  }
   0xb   :  { %921 = vmatpush3.bf16.msra.mxu0 %v1043_v5  ;;  %941 = vmatpush3.bf16.msra.mxu1 %v1044_v6  ;;  %v1065_v45 = vld [vmem:[%s1396_s3] sm:$0xff]   ;;  %v1067_v46 = vld [vmem:[%s1396_s3 + $0x8] sm:$0xff]   ;;  %v1066_v47 = vld [vmem:[%s1396_s3 + $0x50] sm:$0xff]  }
   0xc   :  { %922 = vmatprep.subr.bf16.mxu0 %v1087_v0  ;;  %942 = vmatprep.subr.bf16.mxu1 %v1087_v0  ;;  %v1069_v48 = vld [vmem:[%s1396_s3 + $0x10] sm:$0xff]   ;;  %v1068_v49 = vld [vmem:[%s1396_s3 + $0x58] sm:$0xff]   ;;  %v1070_v51 = vld [vmem:[%s1396_s3 + $0x60] sm:$0xff]  }
   0xd   :  { %v1071_v50 = vld [vmem:[%s1396_s3 + $0x18] sm:$0xff]   ;;  %v1073_v52 = vld [vmem:[%s1396_s3 + $0x20] sm:$0xff]   ;;  %v1072_v53 = vld [vmem:[%s1396_s3 + $0x68] sm:$0xff]  }
   0xe   :  { %v1074_v54 = vld [vmem:[%s1396_s3 + $0x70] sm:$0xff]   ;;  %v1075_v55 = vld [vmem:[%s1396_s3 + $0x28] sm:$0xff]   ;;  %v1076_v56 = vld [vmem:[%s1396_s3 + $0x78] sm:$0xff]  }
   0xf   :  { %923 = vmatpush3.bf16.msra.mxu0 %v1045_v7  ;;  %943 = vmatpush3.bf16.msra.mxu1 %v1046_v8  ;;  %v1077_v57 = vld [vmem:[%s1396_s3 + $0x30] sm:$0xff]   ;;  %v1078_v58 = vld [vmem:[%s1396_s3 + $0x38] sm:$0xff]   ;;  %v794_v7 = vld [vmem:[%s1397_s2] ss:$0 sm:$0xff] }
  0x10   :  { %924 = vmatprep.subr.bf16.mxu0 %v1087_v0  ;;  %944 = vmatprep.subr.bf16.mxu1 %v1087_v0  ;;  %v1081_v16 = vld [vmem:[%s1396_s3 + $0x90] sm:$0xff]   ;;  %v1082_v34 = vld [vmem:[%s1396_s3 + $0x98] sm:$0xff]   ;;  %v1083_v28 = vld [vmem:[%s1396_s3 + $0xa0] sm:$0xff]  }
  0x11   :  { %v1084_v35 = vld [vmem:[%s1396_s3 + $0xa8] sm:$0xff]   ;;  %v1086_v37 = vld [vmem:[%s1396_s3 + $0xb8] sm:$0xff]  }
  0x13   :  { %925 = vmatpush3.bf16.msra.mxu0 %v1047_v9  ;;  %945 = vmatpush3.bf16.msra.mxu1 %v1048_v10 }
  0x14   :  { %926 = vmatprep.subr.bf16.mxu0 %v1087_v0  ;;  %946 = vmatprep.subr.bf16.mxu1 %v1087_v0 }
  0x17   :  { %927 = vmatpush3.bf16.msra.mxu0 %v1049_v12  ;;  %947 = vmatpush3.bf16.msra.mxu1 %v1050_v13 }
  0x18   :  { %928 = vmatprep.subr.bf16.mxu0 %v1087_v0  ;;  %948 = vmatprep.subr.bf16.mxu1 %v1087_v0 }
  0x1b   :  { %929 = vmatpush3.bf16.msra.mxu0 %v1051_v17  ;;  %949 = vmatpush3.bf16.msra.mxu1 %v1052_v18 }
  0x1c   :  { %930 = vmatprep.subr.bf16.mxu0 %v1087_v0  ;;  %950 = vmatprep.subr.bf16.mxu1 %v1087_v0 }
  0x1f   :  { %931 = vmatpush3.bf16.msra.mxu0 %v1053_v21  ;;  %951 = vmatpush3.bf16.msra.mxu1 %v1054_v22  ;;  %v1079_v21 = vld [vmem:[%s1396_s3 + $0x80] sm:$0xff]  }
  0x20   :  { %956 = vmatprep.subr.bf16.mxu0 %v1087_v0  ;;  %976 = vmatprep.subr.bf16.mxu1 %v1087_v0 }
  0x22   :  { %933 = vmatmul.mubr.bf16.vlgmr.msra.gmra.mrb[0].mxu0 %v61_v25  ;;  %953 = vmatmul.mubr.msk.bf16.vlgmr.msra.gmra.mrb[0].mxu1 %vm1214_vm4, %v764_v26 }
  0x23   :  { %957 = vmatpush3.bf16.msra.mxu0 %v1055_v27  ;;  %972 = vmatprep.mubr.msk.bf16.mxu0 %vm1088_vm0, %v1087_v0 }
  0x24   :  { %958 = vmatprep.subr.bf16.mxu0 %v1087_v0  ;;  %992 = vmatprep.mubr.msk.bf16.mxu1 %vm1088_vm0, %v1087_v0 }
  0x25   :  { %977 = vmatpush3.bf16.msra.mxu1 %v1063_v43 }
  0x26   :  { %978 = vmatprep.subr.bf16.mxu1 %v1087_v0 }
  0x27   :  { %959 = vmatpush3.bf16.msra.mxu0 %v1056_v29 }
  0x28   :  { %960 = vmatprep.subr.bf16.mxu0 %v1087_v0 }
  0x29   :  { %979 = vmatpush3.bf16.msra.mxu1 %v1064_v44 }
  0x2a   :  { %980 = vmatprep.subr.bf16.mxu1 %v1087_v0 }
  0x2b   :  { %961 = vmatpush3.bf16.msra.mxu0 %v1057_v30 }
  0x2c   :  { %962 = vmatprep.subr.bf16.mxu0 %v1087_v0 }
  0x2d   :  { %981 = vmatpush3.bf16.msra.mxu1 %v1066_v47 }
  0x2e   :  { %982 = vmatprep.subr.bf16.mxu1 %v1087_v0 }
  0x2f   :  { %963 = vmatpush3.bf16.msra.mxu0 %v1058_v31 }
  0x30   :  { %964 = vmatprep.subr.bf16.mxu0 %v1087_v0 }
  0x31   :  { %983 = vmatpush3.bf16.msra.mxu1 %v1068_v49 }
  0x32   :  { %984 = vmatprep.subr.bf16.mxu1 %v1087_v0 }
  0x33   :  { %965 = vmatpush3.bf16.msra.mxu0 %v1059_v32  ;;  %v1080_v32 = vld [vmem:[%s1396_s3 + $0x88] sm:$0xff]  }
  0x34   :  { %966 = vmatprep.subr.bf16.mxu0 %v1087_v0 }
  0x35   :  { %985 = vmatpush3.bf16.msra.mxu1 %v1070_v51 }
  0x36   :  { %986 = vmatprep.subr.bf16.mxu1 %v1087_v0 }
  0x37   :  { %967 = vmatpush3.bf16.msra.mxu0 %v1060_v33 }
  0x38   :  { %968 = vmatprep.subr.bf16.mxu0 %v1087_v0 }
  0x39   :  { %987 = vmatpush3.bf16.msra.mxu1 %v1072_v53 }
  0x3a   :  { %988 = vmatprep.subr.bf16.mxu1 %v1087_v0 }
  0x3b   :  { %969 = vmatpush3.bf16.msra.mxu0 %v1061_v36  ;;  %v1085_v36 = vld [vmem:[%s1396_s3 + $0xb0] sm:$0xff]  }
  0x3c   :  { %970 = vmatprep.subr.bf16.mxu0 %v1087_v0 }
  0x3d   :  { %989 = vmatpush3.bf16.msra.mxu1 %v1074_v54 }
  0x3e   :  { %990 = vmatprep.subr.bf16.mxu1 %v1087_v0 }
  0x3f   :  { %971 = vmatpush3.bf16.msra.mxu0 %v1062_v38 }
  0x40   :  { %996 = vmatprep.subr.bf16.mxu0 %v1087_v0 }
  0x41   :  { %991 = vmatpush3.bf16.msra.mxu1 %v1076_v56 }
  0x42   :  { %973 = vmatmul.mubr.msk.bf16.vlgmr.msra.gmra.mrb[4].mxu0 %vm1263_vm7, %v792_v41  ;;  %1016 = vmatprep.subr.bf16.mxu1 %v1087_v0 }
  0x43   :  { %1012 = vmatprep.mubr.msk.bf16.mxu0 %vm1088_vm0, %v1087_v0  ;;  %997 = vmatpush3.bf16.msra.mxu0 %v1065_v45 }
  0x44   :  { %998 = vmatprep.subr.bf16.mxu0 %v1087_v0 }
  0x47   :  { %999 = vmatpush3.bf16.msra.mxu0 %v1067_v46 }
  0x48   :  { %1000 = vmatprep.subr.bf16.mxu0 %v1087_v0 }
  0x4b   :  { %1001 = vmatpush3.bf16.msra.mxu0 %v1069_v48 }
  0x4c   :  { %1002 = vmatprep.subr.bf16.mxu0 %v1087_v0 }
  0x4f   :  { %1003 = vmatpush3.bf16.msra.mxu0 %v1071_v50  ;;  %v859_v50 = vld [vmem:[%s1398_s4] ss:$0 sm:$0xff] }
  0x50   :  { %1004 = vmatprep.subr.bf16.mxu0 %v1087_v0 }
  0x53   :  { %1005 = vmatpush3.bf16.msra.mxu0 %v1073_v52 }
  0x54   :  { %1006 = vmatprep.subr.bf16.mxu0 %v1087_v0 }
  0x57   :  { %1007 = vmatpush3.bf16.msra.mxu0 %v1075_v55 }
  0x58   :  { %1008 = vmatprep.subr.bf16.mxu0 %v1087_v0 }
  0x5b   :  { %1009 = vmatpush3.bf16.msra.mxu0 %v1077_v57 }
  0x5c   :  { %1010 = vmatprep.subr.bf16.mxu0 %v1087_v0 }
  0x5f   :  { %1011 = vmatpush3.bf16.msra.mxu0 %v1078_v58 }
  0xf5   :  { %v161_v59 = vpop.f32.mrb[0].mxu0  ;;  %v250_v60 = vpop.f32.mrb[0].mxu1 }
  0xf6   :  { %v934_v61 = vpop.f32.mrb[1].mxu0  ;;  %v251_v62 = vadd.f32 %v250_v60, %v161_v59  ;;  %v954_v63 = vpop.f32.mrb[1].mxu1 }
  0xf7   :  { %v164_v1 = vpop.f32.mrb[2].mxu0  ;;  %v253_v2 = vpop.f32.mrb[2].mxu1 }
  0xf8   :  { %v935_v3 = vpop.f32.mrb[3].mxu0  ;;  %v254_v4 = vadd.f32 %v253_v2, %v164_v1  ;;  %v955_v5 = vpop.f32.mrb[3].mxu1 }
 0x115   :  { %v357_v6 = vpop.f32.mrb[4].mxu0 }
 0x116   :  { %v364_v8 = vadd.f32 %v357_v6, %v251_v62  ;;  %v974_v9 = vpop.f32.mrb[5].mxu0 }
 0x117   :  { %v360_v10 = vpop.f32.mrb[6].mxu0 }
 0x118   :  { %v373_v11 = vadd.f32 %v794_v7, %v364_v8  ;;  %v365_v12 = vadd.f32 %v360_v10, %v254_v4  ;;  %v975_v13 = vpop.f32.mrb[7].mxu0 }
 0x11a   :  { %v375_v17 = vmax.f32 %v373_v11, 0.0  ;;  %v374_v18 = vadd.f32 %v794_v7, %v365_v12 }
 0x11c   :  { %v376_v19 = vmax.f32 %v374_v18, 0.0  ;;  %v377_v20 = vrot.slane %v375_v17, 7  ;;  %v383_v22 = vrot.slane %v375_v17, 1 }
 0x11e   :  { %v378_v23 = vrot.slane %v376_v19, 7  ;;  %v384_v24 = vrot.slane %v376_v19, 1  ;;  %v406_v25 = vpack.c.bf16 %v376_v19, %v375_v17 }
 0x120   :  { %v379_v26 = vsel %vm32_vm1, %v377_v20, %v378_v23  ;;  %v380_v27 = vsel %vm32_vm1, %v378_v23, %v377_v20  ;;  %v385_v29 = vsel %vm39_vm5, %v383_v22, %v384_v24  ;;  %v386_v30 = vsel %vm39_vm5, %v384_v24, %v383_v22  ;;  %993 = vmatmul.mubr.bf16.vlgmr.msra.gmra.mrb[4].mxu1 %v406_v25 }
 0x121   :  { %1017 = vmatpush3.bf16.msra.mxu1 %v1079_v21  ;;  %v829_v31 = vpack.c.bf16 %v379_v26, %v380_v27  ;;  %1032 = vmatprep.mubr.msk.bf16.mxu1 %vm1088_vm0, %v1087_v0  ;;  %v857_v33 = vpack.c.bf16 %v386_v30, %v385_v29 }
 0x122   :  { %1018 = vmatprep.subr.bf16.mxu1 %v1087_v0 }
 0x123   :  { %1013 = vmatmul.mubr.msk.bf16.vlgmr.msra.gmra.mrb[8].mxu0 %vm1214_vm4, %v829_v31 }
 0x125   :  { %1019 = vmatpush3.bf16.msra.mxu1 %v1080_v32 }
 0x126   :  { %1020 = vmatprep.subr.bf16.mxu1 %v1087_v0 }
 0x129   :  { %1021 = vmatpush3.bf16.msra.mxu1 %v1081_v16 }
 0x12a   :  { %1022 = vmatprep.subr.bf16.mxu1 %v1087_v0 }
 0x12d   :  { %1023 = vmatpush3.bf16.msra.mxu1 %v1082_v34 }
 0x12e   :  { %1024 = vmatprep.subr.bf16.mxu1 %v1087_v0 }
 0x131   :  { %1025 = vmatpush3.bf16.msra.mxu1 %v1083_v28 }
 0x132   :  { %1026 = vmatprep.subr.bf16.mxu1 %v1087_v0 }
 0x135   :  { %1027 = vmatpush3.bf16.msra.mxu1 %v1084_v35 }
 0x136   :  { %1028 = vmatprep.subr.bf16.mxu1 %v1087_v0 }
 0x139   :  { %1029 = vmatpush3.bf16.msra.mxu1 %v1085_v36 }
 0x13a   :  { %1030 = vmatprep.subr.bf16.mxu1 %v1087_v0 }
 0x13d   :  { %1031 = vmatpush3.bf16.msra.mxu1 %v1086_v37 }
 0x140   :  { %1033 = vmatmul.mubr.msk.bf16.vlgmr.msra.gmra.mrb[8].mxu1 %vm1263_vm7, %v857_v33 }
 0x1f3   :  { %v506_v38 = vpop.f32.mrb[4].mxu1 }
 0x1f4   :  { %v994_v39 = vpop.f32.mrb[5].mxu1 }
 0x1f5   :  { %v509_v40 = vpop.f32.mrb[6].mxu1 }
 0x1f6   :  { %v995_v41 = vpop.f32.mrb[7].mxu1  ;;  %v595_v43 = vpop.f32.mrb[8].mxu0 }
 0x1f7   :  { %v596_v44 = vadd.f32 %v595_v43, %v506_v38  ;;  %v1014_v45 = vpop.f32.mrb[9].mxu0 }
 0x1f8   :  { %v598_v46 = vpop.f32.mrb[10].mxu0 }
 0x1f9   :  { %v599_v47 = vadd.f32 %v598_v46, %v509_v40  ;;  %v1015_v48 = vpop.f32.mrb[11].mxu0 }
 0x213   :  { %v702_v49 = vpop.f32.mrb[8].mxu1 }
 0x214   :  { %v709_v0 = vadd.f32 %v702_v49, %v596_v44  ;;  %v1034_v51 = vpop.f32.mrb[9].mxu1 }
 0x215   :  { %v705_v52 = vpop.f32.mrb[10].mxu1 }
 0x216   :  { %v718_v42 = vadd.f32 %v859_v50, %v709_v0  ;;  %v710_v53 = vadd.f32 %v705_v52, %v599_v47  ;;  %v1035_v54 = vpop.f32.mrb[11].mxu1 }
 0x218   :  { %v720_v55 = vadd.f32 %v718_v42, %v1174_v14  ;;  %v719_v56 = vadd.f32 %v859_v50, %v710_v53 }
 0x21a   :  { %v722_v57 = vmax.f32 %v720_v55, 0.0  ;;  %v721_v58 = vadd.f32 %v719_v56, %v1180_v15 }
 0x21c   :  { %724 = vst [vmem:[%s1399_s5] sm:$0xff] %v722_v57  ;;  %v723_v59 = vmax.f32 %v721_v58, 0.0 }
 0x21e   :  { %725 = vst [vmem:[%s1399_s5 + $0x8] sm:$0xff] %v723_v59 }

</bundles_post_ra>
